<compile_context>
chip_gen: v6e
topology: v6e:2x2x1
jax: 0.10.0
libtpu: 0.0.40
codegen_flags: <defaults>
</compile_context>

<pallas_src>
import functools
import math

import jax
import jax.numpy as jnp
from jax.experimental import pallas as pl
from jax.experimental.pallas import tpu as pltpu

GENERATORCONFIGS = {
    "mnist": (512, 28), "fmnist": (512, 28), "emnist": (512, 28),
    "rmnist": (512, 28), "cifar": (512, 32), "cinic10": (512, 32),
    "cifar100": (512, 32), "pacs": (512, 224),
}

BN_EPS = 1e-5
LEAKY_SLOPE = 0.01
LANE = 128           # lane-dense padding for the z_dim / n_class axes
IN_PAD = 2 * LANE    # merged (eps | one_hot) operand width (K = 256)


def _generator_kernel(x_ref, w1_ref, gamma_ref, beta_ref, w2_ref, b2_ref, out_ref):
    # ---- fc layer: single merged K=256 bf16 matmul, f32 accumulation.
    # eps occupies lanes [0,128), one_hot lanes [128,256); the zero-padded lanes hit
    # zero W1 rows, so the padding is exact. b1 is omitted: training-mode BatchNorm
    # subtracts the batch mean, which cancels a constant bias exactly.
    h = jnp.dot(x_ref[...], w1_ref[...], preferred_element_type=jnp.float32)

    # ---- BatchNorm1d (training mode: batch mean, biased batch variance) ----
    # One-pass variance (E[x^2] - mean^2); gamma folded into the normalization scale.
    mean = jnp.mean(h, axis=0, keepdims=True)
    var = jnp.mean(h * h, axis=0, keepdims=True) - mean * mean
    scale = gamma_ref[...] * jax.lax.rsqrt(var + BN_EPS)
    h = (h - mean) * scale + beta_ref[...]

    # ---- ReLU ----
    h = jnp.maximum(h, 0.0)

    # ---- representation layer: Linear(hidden -> latent), bf16 MXU, lane-dense out ----
    z = jnp.dot(h.astype(jnp.bfloat16), w2_ref[...],
                preferred_element_type=jnp.float32) + b2_ref[...]

    # ---- LeakyReLU (negative_slope = 0.01) ----
    out_ref[...] = jnp.where(z >= 0.0, z, LEAKY_SLOPE * z)


@functools.partial(jax.jit, static_argnames=("z_dim", "n_class"))
def generator_forward(labels, params, rng_key, *, z_dim, n_class):
    """Runs the Generator forward pass. Returns (z, eps), each (B, z_dim)."""
    batch = labels.shape[0]

    # eps ~ U[0,1) (torch.rand equivalent). Generated outside the kernel so the
    # kernel contains no TPU-only PRNG primitives (runs under interpret mode too).
    eps = jax.random.uniform(rng_key, (batch, z_dim), jnp.float32)

    # Merged, lane-dense (B, 256) operand: eps in lanes [0, z_dim),
    # one_hot(labels) in lanes [128, 128 + n_class); zero elsewhere.
    onehot = jax.nn.one_hot(labels, n_class, dtype=jnp.float32)
    x = jnp.zeros((batch, IN_PAD), jnp.float32)
    x = x.at[:, :z_dim].set(eps).at[:, LANE:LANE + n_class].set(onehot)
    x = x.astype(jnp.bfloat16)

    vmem = pl.BlockSpec(memory_space=pltpu.MemorySpace.VMEM)
    out_pad = pl.pallas_call(
        _generator_kernel,
        out_shape=jax.ShapeDtypeStruct((batch, LANE), jnp.float32),
        in_specs=[vmem] * 6,
        out_specs=vmem,
    )(x, params["w1"], params["gamma"], params["beta"], params["w2"], params["b2"])

    return out_pad[:, :z_dim], eps


def init_generator_params(key, num_classes, z_dim, dataset="cifar"):
    hidden_dim, _input_channel = GENERATORCONFIGS[dataset]
    assert z_dim <= LANE and num_classes <= LANE
    input_dim = z_dim + num_classes
    k1, k2, k3 = jax.random.split(key, 3)

    # Deterministic synthetic init (PyTorch-like uniform fan-in scaling).
    bound1 = 1.0 / math.sqrt(input_dim)
    bound2 = 1.0 / math.sqrt(hidden_dim)

    # (in, out) layout so the kernel computes x @ W.
    w1 = jax.random.uniform(k1, (input_dim, hidden_dim), jnp.float32, -bound1, bound1)
    # b1 intentionally not created: exactly cancelled by BN mean subtraction.
    w2 = jax.random.uniform(k2, (hidden_dim, z_dim), jnp.float32, -bound2, bound2)
    b2 = jax.random.uniform(k3, (1, z_dim), jnp.float32, -bound2, bound2)

    # Merged, zero-padded W1: noise rows at [0, z_dim), class rows at [128, 128+n_class).
    w1p = jnp.zeros((IN_PAD, hidden_dim), jnp.float32)
    w1p = w1p.at[:z_dim].set(w1[:z_dim]).at[LANE:LANE + num_classes].set(w1[z_dim:])
    # W2 / b2 padded to 128 output lanes (zero padding keeps the math exact).
    w2p = jnp.zeros((hidden_dim, LANE), jnp.float32).at[:, :z_dim].set(w2)
    b2p = jnp.zeros((1, LANE), jnp.float32).at[:, :z_dim].set(b2)

    return {
        "w1": w1p.astype(jnp.bfloat16),   # bf16 weights: half the weight DMA, native MXU
        "gamma": jnp.ones((1, hidden_dim), jnp.float32),
        "beta": jnp.zeros((1, hidden_dim), jnp.float32),
        "w2": w2p.astype(jnp.bfloat16),
        "b2": b2p,
    }


def _reference_from_eps(eps, labels, params, z_dim, n_class):
    """Pure-JAX reference consuming the same eps, bf16-consistent with the kernel."""
    batch = eps.shape[0]
    onehot = jax.nn.one_hot(labels, n_class, dtype=jnp.float32)
    x = jnp.zeros((batch, IN_PAD), jnp.float32)
    x = x.at[:, :z_dim].set(eps).at[:, LANE:LANE + n_class].set(onehot)
    h = jnp.dot(x.astype(jnp.bfloat16), params["w1"],
                preferred_element_type=jnp.float32)
    mean = jnp.mean(h, axis=0, keepdims=True)
    var = jnp.mean(h * h, axis=0, keepdims=True) - mean * mean
    h = (h - mean) * (params["gamma"] * jax.lax.rsqrt(var + BN_EPS)) + params["beta"]
    h = jnp.maximum(h, 0.0)
    z = jnp.dot(h.astype(jnp.bfloat16), params["w2"],
                preferred_element_type=jnp.float32) + params["b2"]
    z = jnp.where(z >= 0.0, z, LEAKY_SLOPE * z)
    return z[:, :z_dim]


if __name__ == "__main__":
    num_classes = 10
    z_dim = 32          # latent / noise dim
    batch = 8
    dataset = "cifar"   # hidden_dim = 512

    root = jax.random.PRNGKey(0)
    k_param, k_label, k_eps = jax.random.split(root, 3)

    params = init_generator_params(k_param, num_classes, z_dim, dataset)
    labels = jax.random.randint(k_label, (batch,), 0, num_classes, jnp.int32)

    z_out, eps_out = generator_forward(labels, params, k_eps,
                                       z_dim=z_dim, n_class=num_classes)
    z_out = jax.block_until_ready(z_out)
    eps_out = jax.block_until_ready(eps_out)

    assert z_out.shape == (batch, z_dim)
    assert eps_out.shape == (batch, z_dim)
    # eps must be a valid U[0,1) draw.
    assert bool(jnp.all((eps_out >= 0.0) & (eps_out < 1.0)))

    # Deterministic part of the forward checked against a bf16-consistent
    # pure-JAX reference driven by the same eps.
    z_ref = _reference_from_eps(eps_out, labels, params, z_dim, num_classes)
    assert jnp.allclose(z_out, z_ref, atol=2e-3, rtol=2e-3), (
        float(jnp.max(jnp.abs(z_out - z_ref))))

    print("KERNEL_OK")
</pallas_src>

<mosaic_0001>
module attributes {stable_mosaic.version = 11 : i64} {
  func.func @_generator_kernel(%arg0: memref<8x256xbf16, #tpu.memory_space<vmem>>, %arg1: memref<256x512xbf16, #tpu.memory_space<vmem>>, %arg2: memref<1x512xf32, #tpu.memory_space<vmem>>, %arg3: memref<1x512xf32, #tpu.memory_space<vmem>>, %arg4: memref<512x128xbf16, #tpu.memory_space<vmem>>, %arg5: memref<1x128xf32, #tpu.memory_space<vmem>>, %arg6: memref<8x128xf32, #tpu.memory_space<vmem>>) attributes {dimension_semantics = [], scalar_prefetch = 0 : i64, scratch_operands = 0 : i64, tpu.core_type = #tpu.core_type<tc>} {
    %c0 = arith.constant 0 : index
    %c0_0 = arith.constant 0 : index
    %0 = vector.load %arg0[%c0, %c0_0] : memref<8x256xbf16, #tpu.memory_space<vmem>>, vector<8x256xbf16>
    %c0_1 = arith.constant 0 : index
    %c0_2 = arith.constant 0 : index
    %1 = vector.load %arg1[%c0_1, %c0_2] : memref<256x512xbf16, #tpu.memory_space<vmem>>, vector<256x512xbf16>
    %cst = arith.constant dense<0.000000e+00> : vector<8x512xf32>
    %2 = tpu.matmul %0, %1, %cst {dimension_numbers = #tpu.dot_dimension_numbers<[1], [0], [0], [1], [0, 0, 1, 1], [], []>} : vector<8x256xbf16>, vector<256x512xbf16>, vector<8x512xf32> -> vector<8x512xf32>
    %cst_3 = arith.constant dense<0.000000e+00> : vector<512xf32>
    %3 = vector.multi_reduction <add>, %2, %cst_3 [0] : vector<8x512xf32> to vector<512xf32>
    %4 = vector.shape_cast %3 : vector<512xf32> to vector<1x512xf32>
    %cst_4 = arith.constant 8.000000e+00 : f32
    %5 = vector.broadcast %cst_4 : f32 to vector<1x512xf32>
    %6 = arith.divf %4, %5 : vector<1x512xf32>
    %7 = arith.mulf %2, %2 : vector<8x512xf32>
    %cst_5 = arith.constant dense<0.000000e+00> : vector<512xf32>
    %8 = vector.multi_reduction <add>, %7, %cst_5 [0] : vector<8x512xf32> to vector<512xf32>
    %9 = vector.shape_cast %8 : vector<512xf32> to vector<1x512xf32>
    %cst_6 = arith.constant 8.000000e+00 : f32
    %10 = vector.broadcast %cst_6 : f32 to vector<1x512xf32>
    %11 = arith.divf %9, %10 : vector<1x512xf32>
    %12 = arith.mulf %6, %6 : vector<1x512xf32>
    %13 = arith.subf %11, %12 : vector<1x512xf32>
    %c0_7 = arith.constant 0 : index
    %c0_8 = arith.constant 0 : index
    %14 = vector.load %arg2[%c0_7, %c0_8] : memref<1x512xf32, #tpu.memory_space<vmem>>, vector<1x512xf32>
    %cst_9 = arith.constant 9.99999974E-6 : f32
    %15 = vector.broadcast %cst_9 : f32 to vector<1x512xf32>
    %16 = arith.addf %13, %15 : vector<1x512xf32>
    %17 = math.rsqrt %16 : vector<1x512xf32>
    %18 = arith.mulf %14, %17 : vector<1x512xf32>
    %19 = vector.broadcast %6 : vector<1x512xf32> to vector<8x512xf32>
    %20 = arith.subf %2, %19 : vector<8x512xf32>
    %21 = vector.broadcast %18 : vector<1x512xf32> to vector<8x512xf32>
    %22 = arith.mulf %20, %21 : vector<8x512xf32>
    %c0_10 = arith.constant 0 : index
    %c0_11 = arith.constant 0 : index
    %23 = vector.load %arg3[%c0_10, %c0_11] : memref<1x512xf32, #tpu.memory_space<vmem>>, vector<1x512xf32>
    %24 = vector.broadcast %23 : vector<1x512xf32> to vector<8x512xf32>
    %25 = arith.addf %22, %24 : vector<8x512xf32>
    %cst_12 = arith.constant 0.000000e+00 : f32
    %26 = vector.broadcast %cst_12 : f32 to vector<8x512xf32>
    %27 = arith.maximumf %25, %26 : vector<8x512xf32>
    %28 = arith.truncf %27 : vector<8x512xf32> to vector<8x512xbf16>
    %c0_13 = arith.constant 0 : index
    %c0_14 = arith.constant 0 : index
    %29 = vector.load %arg4[%c0_13, %c0_14] : memref<512x128xbf16, #tpu.memory_space<vmem>>, vector<512x128xbf16>
    %cst_15 = arith.constant dense<0.000000e+00> : vector<8x128xf32>
    %30 = tpu.matmul %28, %29, %cst_15 {dimension_numbers = #tpu.dot_dimension_numbers<[1], [0], [0], [1], [0, 0, 1, 1], [], []>} : vector<8x512xbf16>, vector<512x128xbf16>, vector<8x128xf32> -> vector<8x128xf32>
    %c0_16 = arith.constant 0 : index
    %c0_17 = arith.constant 0 : index
    %31 = vector.load %arg5[%c0_16, %c0_17] : memref<1x128xf32, #tpu.memory_space<vmem>>, vector<1x128xf32>
    %32 = vector.broadcast %31 : vector<1x128xf32> to vector<8x128xf32>
    %33 = arith.addf %30, %32 : vector<8x128xf32>
    %cst_18 = arith.constant 0.000000e+00 : f32
    %34 = vector.broadcast %cst_18 : f32 to vector<8x128xf32>
    %35 = arith.cmpf oge, %33, %34 : vector<8x128xf32>
    %cst_19 = arith.constant 0.00999999977 : f32
    %36 = vector.broadcast %cst_19 : f32 to vector<8x128xf32>
    %37 = arith.mulf %36, %33 : vector<8x128xf32>
    %38 = arith.select %35, %33, %37 : vector<8x128xi1>, vector<8x128xf32>
    %c0_20 = arith.constant 0 : index
    %c0_21 = arith.constant 0 : index
    %39 = vector.load %arg6[%c0_20, %c0_21] : memref<8x128xf32, #tpu.memory_space<vmem>>, vector<8x128xf32>
    tpu.vector_store %arg6[%c0_20, %c0_21], %38 {strides = array<i32>} : memref<8x128xf32, #tpu.memory_space<vmem>>, vector<8x128xf32>,
    return
  }
}

</mosaic_0001>

<bundles_post_ra>
// kernel: generator_forward.1
= control target key start
LH: loop header
LB: loop body
LE: loop exit
PB: predicated region body
PF: predicated region fallthrough
CT: control target
= control target key end

     0   :  { %11 = vsyncpa [#allocation3], 0  ;;  %s1518_s0 = inlined_call_operand.vmem [shape: bf16[8,256], index: 0, kind: input, shape index: {}]   ;;  %s1519_s1 = inlined_call_operand.hbm [shape: bf16[256,512], index: 1, kind: input, shape index: {}]   ;;  %s1520_s2 = inlined_call_operand.vmem [shape: f32[1,512], index: 2, kind: input, shape index: {}]   ;;  %s1521_s3 = inlined_call_operand.vmem [shape: f32[1,512], index: 3, kind: input, shape index: {}]   ;;  %s1522_s4 = inlined_call_operand.hbm [shape: bf16[512,128], index: 4, kind: input, shape index: {}]   ;;  %s1523_s5 = inlined_call_operand.vmem [shape: f32[1,128], index: 5, kind: input, shape index: {}]   ;;  %s1524_s6 = inlined_call_operand.hbm [shape: f32[8,128], index: 6, kind: output, shape index: {}]  }
   0x1   :  { %12 = vsyncpa [#allocation6], 0 }
   0x2   :  { %13 = vsyncpa [#allocation4], 0  ;;  %s1416_s21 = smov [#allocation2]  }
   0x3   :  { %s21_s22 = sshll.u32 %s1416_s21, 4  ;;  %s22_s22 = int_to_ptr.vmem [resolvable:$true] %s21_s22 }
   0x4   :  { %s1358_s23 = scalar_lea.vmem %s22_s22, 8192  ;;  %p1363_p1 = scmp.lt.s32.totalorder %s22_s22, %s22_s22 }
   0x5   :  { %p1359_p0 = scmp.ne.s32.totalorder %s22_s22, %s1358_s23  ;;  %p1364_p2 = scmp.lt.s32.totalorder %s1358_s23, %s1358_s23 }
   0x7   :  { %p1365_p3 = por %p1364_p2, %p1363_p1 }
   0x9   :  { %p1366_p4 = pnand %p1365_p3, %p1359_p0 }
   0xb   :  { %1369 = shalt.err (!%p1366_p4)
}
   0xc   :  { %s1417_s24 = smov 256   ;;  %s1418_s25 = smov 16  }
   0xd   :  { %27 = dma.hbm_to_vmem [thread:$0]  %s1519_s1, 8192, %s22_s22, [#allocation3], %s1417_s24, %s1417_s24, %s1418_s25  }
   0xe   :  { %s1419_s28 = smov [#allocation5]  }
   0xf   :  { %s37_s29 = sshll.u32 %s1419_s28, 4  ;;  %s38_s29 = int_to_ptr.vmem [resolvable:$true] %s37_s29 }
  0x10   :  { %s1378_s30 = scalar_lea.vmem %s38_s29, 4096  ;;  %p1383_p6 = scmp.lt.s32.totalorder %s38_s29, %s38_s29 }
  0x11   :  { %p1379_p5 = scmp.ne.s32.totalorder %s38_s29, %s1378_s30  ;;  %p1384_p7 = scmp.lt.s32.totalorder %s1378_s30, %s1378_s30 }
  0x13   :  { %p1385_p8 = por %p1384_p7, %p1383_p6 }
  0x15   :  { %p1386_p9 = pnand %p1385_p8, %p1379_p5 }
  0x17   :  { %1389 = shalt.err (!%p1386_p9)
}
  0x18   :  { %s1420_s7 = smov 64   ;;  %s1421_s8 = smov 4  }
  0x19   :  { %43 = dma.hbm_to_vmem [thread:$0]  %s1522_s4, 4096, %s38_s29, [#allocation6], %s1420_s7, %s1420_s7, %s1421_s8  }
  0x1a   :  { %1410 = dma.done.wait [#allocation3], 8192  }
  0x1b   :  { %1411 = vsyncadd [#allocation3], 4294959104 }
  0x1c   :  { %1412 = dma.done.wait [#allocation6], 4096  }
  0x1d   :  { %1413 = vsyncadd [#allocation6], 4294963200  ;;  %v1212_v0 = vld [vmem:[#allocation2 + $0xe4] ss:$16 sps:$4 sm:$0xff]   ;;  %v1214_v1 = vld [vmem:[#allocation2 + $0xec] ss:$16 sps:$4 sm:$0xff]  }
  0x1e   :  { %445 = vmatprep.subr.bf16.mxu0 %v1212_v0  ;;  %v1216_v2 = vld [vmem:[#allocation2 + $0xe0] ss:$16 sps:$4 sm:$0xff]   ;;  %v1217_v3 = vld [vmem:[#allocation2 + $0xe8] ss:$16 sps:$4 sm:$0xff]   ;;  %486 = vmatprep.subr.bf16.mxu1 %v1214_v1  ;;  %v1218_v4 = vld [vmem:[#allocation2 + $0xc4] ss:$16 sps:$4 sm:$0xff]  }
  0x1f   :  { %446 = vmatpush1.bf16.msra.mxu0 %v1216_v2  ;;  %487 = vmatpush1.bf16.msra.mxu1 %v1217_v3  ;;  %v1220_v5 = vld [vmem:[#allocation2 + $0xcc] ss:$16 sps:$4 sm:$0xff]   ;;  %v1222_v6 = vld [vmem:[#allocation2 + $0xc0] ss:$16 sps:$4 sm:$0xff]   ;;  %v1223_v7 = vld [vmem:[#allocation2 + $0xc8] ss:$16 sps:$4 sm:$0xff]  }
  0x20   :  { %447 = vmatprep.subr.bf16.mxu0 %v1218_v4  ;;  %488 = vmatprep.subr.bf16.mxu1 %v1220_v5  ;;  %v1224_v8 = vld [vmem:[#allocation2 + $0xa4] ss:$16 sps:$4 sm:$0xff]   ;;  %v1226_v9 = vld [vmem:[#allocation2 + $0xac] ss:$16 sps:$4 sm:$0xff]   ;;  %v1228_v10 = vld [vmem:[#allocation2 + $0xa0] ss:$16 sps:$4 sm:$0xff]  }
  0x21   :  { %v1229_v11 = vld [vmem:[#allocation2 + $0xa8] ss:$16 sps:$4 sm:$0xff]   ;;  %v1230_v12 = vld [vmem:[#allocation2 + $0x84] ss:$16 sps:$4 sm:$0xff]   ;;  %v1232_v13 = vld [vmem:[#allocation2 + $0x8c] ss:$16 sps:$4 sm:$0xff]  }
  0x22   :  { %v1234_v14 = vld [vmem:[#allocation2 + $0x80] ss:$16 sps:$4 sm:$0xff]   ;;  %v1235_v15 = vld [vmem:[#allocation2 + $0x88] ss:$16 sps:$4 sm:$0xff]   ;;  %v1236_v16 = vld [vmem:[#allocation2 + $0x64] ss:$16 sps:$4 sm:$0xff]  }
  0x23   :  { %448 = vmatpush1.bf16.msra.mxu0 %v1222_v6  ;;  %489 = vmatpush1.bf16.msra.mxu1 %v1223_v7  ;;  %v1238_v17 = vld [vmem:[#allocation2 + $0x6c] ss:$16 sps:$4 sm:$0xff]   ;;  %v1240_v18 = vld [vmem:[#allocation2 + $0x60] ss:$16 sps:$4 sm:$0xff]   ;;  %v1241_v19 = vld [vmem:[#allocation2 + $0x68] ss:$16 sps:$4 sm:$0xff]  }
  0x24   :  { %449 = vmatprep.subr.bf16.mxu0 %v1224_v8  ;;  %490 = vmatprep.subr.bf16.mxu1 %v1226_v9  ;;  %v1242_v20 = vld [vmem:[#allocation2 + $0x44] ss:$16 sps:$4 sm:$0xff]   ;;  %v1244_v21 = vld [vmem:[#allocation2 + $0x4c] ss:$16 sps:$4 sm:$0xff]   ;;  %v1246_v22 = vld [vmem:[#allocation2 + $0x40] ss:$16 sps:$4 sm:$0xff]  }
  0x25   :  { %v1247_v23 = vld [vmem:[#allocation2 + $0x48] ss:$16 sps:$4 sm:$0xff]   ;;  %v1248_v24 = vld [vmem:[#allocation2 + $0x24] ss:$16 sps:$4 sm:$0xff]   ;;  %v1250_v25 = vld [vmem:[#allocation2 + $0x2c] ss:$16 sps:$4 sm:$0xff]  }
  0x26   :  { %v1252_v26 = vld [vmem:[#allocation2 + $0x20] ss:$16 sps:$4 sm:$0xff]   ;;  %v1253_v27 = vld [vmem:[#allocation2 + $0x28] ss:$16 sps:$4 sm:$0xff]   ;;  %v1254_v28 = vld [vmem:[#allocation2 + $0x4] ss:$16 sps:$4 sm:$0xff]  }
  0x27   :  { %450 = vmatpush1.bf16.msra.mxu0 %v1228_v10  ;;  %491 = vmatpush1.bf16.msra.mxu1 %v1229_v11  ;;  %v1256_v29 = vld [vmem:[#allocation2 + $0xc] ss:$16 sps:$4 sm:$0xff]   ;;  %v1258_v30 = vld [vmem:[#allocation2] ss:$16 sps:$4 sm:$0xff]   ;;  %v1259_v31 = vld [vmem:[#allocation2 + $0x8] ss:$16 sps:$4 sm:$0xff]  }
  0x28   :  { %451 = vmatprep.subr.bf16.mxu0 %v1230_v12  ;;  %492 = vmatprep.subr.bf16.mxu1 %v1232_v13  ;;  %v1260_v32 = vld [vmem:[#allocation2 + $0x1e4] ss:$16 sps:$4 sm:$0xff]   ;;  %v1262_v33 = vld [vmem:[#allocation2 + $0x1ec] ss:$16 sps:$4 sm:$0xff]   ;;  %v1264_v34 = vld [vmem:[#allocation2 + $0x1e0] ss:$16 sps:$4 sm:$0xff]  }
  0x29   :  { %v1265_v35 = vld [vmem:[#allocation2 + $0x1e8] ss:$16 sps:$4 sm:$0xff]   ;;  %v1266_v36 = vld [vmem:[#allocation2 + $0x1c4] ss:$16 sps:$4 sm:$0xff]   ;;  %v1268_v37 = vld [vmem:[#allocation2 + $0x1cc] ss:$16 sps:$4 sm:$0xff]  }
  0x2a   :  { %v1270_v38 = vld [vmem:[#allocation2 + $0x1c0] ss:$16 sps:$4 sm:$0xff]   ;;  %v1271_v39 = vld [vmem:[#allocation2 + $0x1c8] ss:$16 sps:$4 sm:$0xff]   ;;  %v1272_v40 = vld [vmem:[#allocation2 + $0x1a4] ss:$16 sps:$4 sm:$0xff]  }
  0x2b   :  { %452 = vmatpush1.bf16.msra.mxu0 %v1234_v14  ;;  %493 = vmatpush1.bf16.msra.mxu1 %v1235_v15  ;;  %v1274_v41 = vld [vmem:[#allocation2 + $0x1ac] ss:$16 sps:$4 sm:$0xff]   ;;  %v1276_v42 = vld [vmem:[#allocation2 + $0x1a0] ss:$16 sps:$4 sm:$0xff]   ;;  %v1277_v43 = vld [vmem:[#allocation2 + $0x1a8] ss:$16 sps:$4 sm:$0xff]  }
  0x2c   :  { %453 = vmatprep.subr.bf16.mxu0 %v1236_v16  ;;  %494 = vmatprep.subr.bf16.mxu1 %v1238_v17  ;;  %v1278_v44 = vld [vmem:[#allocation2 + $0x184] ss:$16 sps:$4 sm:$0xff]   ;;  %v1280_v45 = vld [vmem:[#allocation2 + $0x18c] ss:$16 sps:$4 sm:$0xff]   ;;  %v1282_v46 = vld [vmem:[#allocation2 + $0x180] ss:$16 sps:$4 sm:$0xff]  }
  0x2d   :  { %v1283_v47 = vld [vmem:[#allocation2 + $0x188] ss:$16 sps:$4 sm:$0xff]   ;;  %v53_v48 = vld [vmem:[%s1518_s0] sm:$0xff]  ;;  %v1286_v50 = vld [vmem:[#allocation2 + $0x16c] ss:$16 sps:$4 sm:$0xff]   ;;  %s1423_s14 = smov [#allocation7]  }
  0x2e   :  { %v1284_v49 = vld [vmem:[#allocation2 + $0x164] ss:$16 sps:$4 sm:$0xff]   ;;  %v1062_v51 = vcombine.high %v53_v48, %v53_v48  ;;  %v1288_v52 = vld [vmem:[#allocation2 + $0x160] ss:$16 sps:$4 sm:$0xff]   ;;  %v1289_v53 = vld [vmem:[#allocation2 + $0x168] ss:$16 sps:$4 sm:$0xff]   ;;  %v1061_v2 = vcombine.low %v53_v48, %v53_v48 }
  0x2f   :  { %454 = vmatpush1.bf16.msra.mxu0 %v1240_v18  ;;  %495 = vmatpush1.bf16.msra.mxu1 %v1241_v19  ;;  %v1290_v54 = vld [vmem:[#allocation2 + $0x144] ss:$16 sps:$4 sm:$0xff]   ;;  %v1292_v55 = vld [vmem:[#allocation2 + $0x14c] ss:$16 sps:$4 sm:$0xff]   ;;  %v1294_v56 = vld [vmem:[#allocation2 + $0x140] ss:$16 sps:$4 sm:$0xff]  }
  0x30   :  { %455 = vmatprep.subr.bf16.mxu0 %v1242_v20  ;;  %496 = vmatprep.subr.bf16.mxu1 %v1244_v21  ;;  %v1295_v57 = vld [vmem:[#allocation2 + $0x148] ss:$16 sps:$4 sm:$0xff]   ;;  %v1296_v58 = vld [vmem:[#allocation2 + $0x124] ss:$16 sps:$4 sm:$0xff]   ;;  %v1298_v59 = vld [vmem:[#allocation2 + $0x12c] ss:$16 sps:$4 sm:$0xff]  }
  0x31   :  { %477 = vmatprep.mubr.bf16.mxu0 %v1062_v51  ;;  %518 = vmatprep.mubr.bf16.mxu1 %v1062_v51  ;;  %v1300_v60 = vld [vmem:[#allocation2 + $0x120] ss:$16 sps:$4 sm:$0xff]   ;;  %v1301_v61 = vld [vmem:[#allocation2 + $0x128] ss:$16 sps:$4 sm:$0xff]   ;;  %v1302_v62 = vld [vmem:[#allocation2 + $0x104] ss:$16 sps:$4 sm:$0xff]  }
  0x32   :  { %v1304_v63 = vld [vmem:[#allocation2 + $0x10c] ss:$16 sps:$4 sm:$0xff]   ;;  %v1306_v0 = vld [vmem:[#allocation2 + $0x100] ss:$16 sps:$4 sm:$0xff]   ;;  %v1307_v1 = vld [vmem:[#allocation2 + $0x108] ss:$16 sps:$4 sm:$0xff]  }
  0x33   :  { %456 = vmatpush1.bf16.msra.mxu0 %v1246_v22  ;;  %497 = vmatpush1.bf16.msra.mxu1 %v1247_v23  ;;  %v1310_v3 = vld [vmem:[#allocation5 + $0x78] sm:$0xff]   ;;  %v1314_v7 = vld [vmem:[#allocation5 + $0x70] sm:$0xff]   ;;  %v1318_v11 = vld [vmem:[#allocation5 + $0x68] sm:$0xff]   ;;  %s1051_s15 = sshll.u32 %s1423_s14, 4  ;;  %s1052_s15 = int_to_ptr.vmem [resolvable:$true] %s1051_s15 }
  0x34   :  { %457 = vmatprep.subr.bf16.mxu0 %v1248_v24  ;;  %498 = vmatprep.subr.bf16.mxu1 %v1250_v25  ;;  %v1311_v4 = vld [vmem:[#allocation5 + $0xf8] sm:$0xff]   ;;  %v1315_v8 = vld [vmem:[#allocation5 + $0xf0] sm:$0xff]   ;;  %v1319_v12 = vld [vmem:[#allocation5 + $0xe8] sm:$0xff]   ;;  %s1390_s16 = scalar_lea.vmem %s1052_s15, 128  ;;  %p1395_p11 = scmp.lt.s32.totalorder %s1052_s15, %s1052_s15 }
  0x35   :  { %v1312_v5 = vld [vmem:[#allocation5 + $0x38] sm:$0xff]   ;;  %v1316_v9 = vld [vmem:[#allocation5 + $0x30] sm:$0xff]   ;;  %v1320_v13 = vld [vmem:[#allocation5 + $0x28] sm:$0xff]   ;;  %p1391_p10 = scmp.ne.s32.totalorder %s1052_s15, %s1390_s16  ;;  %p1396_p12 = scmp.lt.s32.totalorder %s1390_s16, %s1390_s16 }
  0x36   :  { %v1313_v6 = vld [vmem:[#allocation5 + $0xb8] sm:$0xff]   ;;  %v1317_v10 = vld [vmem:[#allocation5 + $0xb0] sm:$0xff]   ;;  %v1321_v14 = vld [vmem:[#allocation5 + $0xa8] sm:$0xff]  }
  0x37   :  { %458 = vmatpush1.bf16.msra.mxu0 %v1252_v26  ;;  %499 = vmatpush1.bf16.msra.mxu1 %v1253_v27  ;;  %v1322_v15 = vld [vmem:[#allocation5 + $0x60] sm:$0xff]   ;;  %v1326_v19 = vld [vmem:[#allocation5 + $0x58] sm:$0xff]   ;;  %v1330_v23 = vld [vmem:[#allocation5 + $0x50] sm:$0xff]   ;;  %p1397_p13 = por %p1396_p12, %p1395_p11 }
  0x38   :  { %459 = vmatprep.subr.bf16.mxu0 %v1254_v28  ;;  %500 = vmatprep.subr.bf16.mxu1 %v1256_v29  ;;  %v1323_v16 = vld [vmem:[#allocation5 + $0xe0] sm:$0xff]   ;;  %v1327_v20 = vld [vmem:[#allocation5 + $0xd8] sm:$0xff]   ;;  %v1331_v24 = vld [vmem:[#allocation5 + $0xd0] sm:$0xff]  }
  0x39   :  { %v1324_v17 = vld [vmem:[#allocation5 + $0x20] sm:$0xff]   ;;  %v1328_v21 = vld [vmem:[#allocation5 + $0x18] sm:$0xff]   ;;  %v1332_v25 = vld [vmem:[#allocation5 + $0x10] sm:$0xff]   ;;  %p1398_p0 = pnand %p1397_p13, %p1391_p10 }
  0x3a   :  { %v1325_v18 = vld [vmem:[#allocation5 + $0xa0] sm:$0xff]   ;;  %v1329_v22 = vld [vmem:[#allocation5 + $0x98] sm:$0xff]   ;;  %v1333_v26 = vld [vmem:[#allocation5 + $0x90] sm:$0xff]  }
  0x3b   :  { %460 = vmatpush1.bf16.msra.mxu0 %v1258_v30  ;;  %501 = vmatpush1.bf16.msra.mxu1 %v1259_v31  ;;  %v1334_v27 = vld [vmem:[#allocation5 + $0x48] sm:$0xff]   ;;  %v1338_v31 = vld [vmem:[#allocation5 + $0x40] sm:$0xff]  }
  0x3c   :  { %461 = vmatprep.subr.bf16.mxu0 %v1260_v32  ;;  %502 = vmatprep.subr.bf16.mxu1 %v1262_v33  ;;  %v1335_v28 = vld [vmem:[#allocation5 + $0xc8] sm:$0xff]   ;;  %v1339_v32 = vld [vmem:[#allocation5 + $0xc0] sm:$0xff]  }
  0x3d   :  { %v1336_v29 = vld [vmem:[#allocation5 + $0x8] sm:$0xff]   ;;  %v1340_v33 = vld [vmem:[#allocation5] sm:$0xff]  }
  0x3e   :  { %v1337_v30 = vld [vmem:[#allocation5 + $0x88] sm:$0xff]  }
  0x3f   :  { %462 = vmatpush2.bf16.msra.mxu0 %v1264_v34  ;;  %503 = vmatpush2.bf16.msra.mxu1 %v1265_v35  ;;  %v1341_v34 = vld [vmem:[#allocation5 + $0x80] sm:$0xff]  }
  0x40   :  { %463 = vmatprep.subr.bf16.mxu0 %v1266_v36  ;;  %504 = vmatprep.subr.bf16.mxu1 %v1268_v37 }
  0x43   :  { %464 = vmatpush2.bf16.msra.mxu0 %v1270_v38  ;;  %505 = vmatpush2.bf16.msra.mxu1 %v1271_v39 }
  0x44   :  { %465 = vmatprep.subr.bf16.mxu0 %v1272_v40  ;;  %506 = vmatprep.subr.bf16.mxu1 %v1274_v41 }
  0x47   :  { %466 = vmatpush2.bf16.msra.mxu0 %v1276_v42  ;;  %507 = vmatpush2.bf16.msra.mxu1 %v1277_v43 }
  0x48   :  { %467 = vmatprep.subr.bf16.mxu0 %v1278_v44  ;;  %508 = vmatprep.subr.bf16.mxu1 %v1280_v45 }
  0x4b   :  { %468 = vmatpush2.bf16.msra.mxu0 %v1282_v46  ;;  %509 = vmatpush2.bf16.msra.mxu1 %v1283_v47 }
  0x4c   :  { %469 = vmatprep.subr.bf16.mxu0 %v1284_v49  ;;  %510 = vmatprep.subr.bf16.mxu1 %v1286_v50 }
  0x4f   :  { %470 = vmatpush2.bf16.msra.mxu0 %v1288_v52  ;;  %511 = vmatpush2.bf16.msra.mxu1 %v1289_v53 }
  0x50   :  { %471 = vmatprep.subr.bf16.mxu0 %v1290_v54  ;;  %512 = vmatprep.subr.bf16.mxu1 %v1292_v55 }
  0x53   :  { %472 = vmatpush2.bf16.msra.mxu0 %v1294_v56  ;;  %513 = vmatpush2.bf16.msra.mxu1 %v1295_v57 }
  0x54   :  { %473 = vmatprep.subr.bf16.mxu0 %v1296_v58  ;;  %514 = vmatprep.subr.bf16.mxu1 %v1298_v59 }
  0x57   :  { %474 = vmatpush2.bf16.msra.mxu0 %v1300_v60  ;;  %515 = vmatpush2.bf16.msra.mxu1 %v1301_v61 }
  0x58   :  { %475 = vmatprep.subr.bf16.mxu0 %v1302_v62  ;;  %516 = vmatprep.subr.bf16.mxu1 %v1304_v63 }
  0x5b   :  { %476 = vmatpush2.bf16.msra.mxu0 %v1306_v0  ;;  %517 = vmatpush2.bf16.msra.mxu1 %v1307_v1 }
  0x5c   :  { %1160 = vmatprep.subr.bf16.mxu0 %v1310_v3  ;;  %1182 = vmatprep.subr.bf16.mxu1 %v1311_v4 }
  0x5e   :  { %478 = vmatmul.mubr.bf16.vlgmr.msra.gmra.mxu0 %v1061_v2  ;;  %519 = vmatmul.mubr.bf16.vlgmr.msra.gmra.mxu1 %v1061_v2 }
  0x5f   :  { %1161 = vmatpush3.bf16.msra.mxu0 %v1312_v5  ;;  %1183 = vmatpush3.bf16.msra.mxu1 %v1313_v6 }
  0x60   :  { %1162 = vmatprep.subr.bf16.mxu0 %v1314_v7  ;;  %1184 = vmatprep.subr.bf16.mxu1 %v1315_v8 }
  0x63   :  { %1163 = vmatpush3.bf16.msra.mxu0 %v1316_v9  ;;  %1185 = vmatpush3.bf16.msra.mxu1 %v1317_v10 }
  0x64   :  { %1164 = vmatprep.subr.bf16.mxu0 %v1318_v11  ;;  %1186 = vmatprep.subr.bf16.mxu1 %v1319_v12 }
  0x67   :  { %1165 = vmatpush3.bf16.msra.mxu0 %v1320_v13  ;;  %1187 = vmatpush3.bf16.msra.mxu1 %v1321_v14 }
  0x68   :  { %1166 = vmatprep.subr.bf16.mxu0 %v1322_v15  ;;  %1188 = vmatprep.subr.bf16.mxu1 %v1323_v16 }
  0x6b   :  { %1167 = vmatpush3.bf16.msra.mxu0 %v1324_v17  ;;  %1189 = vmatpush3.bf16.msra.mxu1 %v1325_v18 }
  0x6c   :  { %1168 = vmatprep.subr.bf16.mxu0 %v1326_v19  ;;  %1190 = vmatprep.subr.bf16.mxu1 %v1327_v20 }
  0x6f   :  { %1169 = vmatpush3.bf16.msra.mxu0 %v1328_v21  ;;  %1191 = vmatpush3.bf16.msra.mxu1 %v1329_v22 }
  0x70   :  { %1170 = vmatprep.subr.bf16.mxu0 %v1330_v23  ;;  %1192 = vmatprep.subr.bf16.mxu1 %v1331_v24 }
  0x73   :  { %1171 = vmatpush3.bf16.msra.mxu0 %v1332_v25  ;;  %1193 = vmatpush3.bf16.msra.mxu1 %v1333_v26 }
  0x74   :  { %1172 = vmatprep.subr.bf16.mxu0 %v1334_v27  ;;  %1194 = vmatprep.subr.bf16.mxu1 %v1335_v28 }
  0x77   :  { %1173 = vmatpush3.bf16.msra.mxu0 %v1336_v29  ;;  %1195 = vmatpush3.bf16.msra.mxu1 %v1337_v30 }
  0x78   :  { %1174 = vmatprep.subr.bf16.mxu0 %v1338_v31  ;;  %1196 = vmatprep.subr.bf16.mxu1 %v1339_v32 }
  0x7b   :  { %1175 = vmatpush3.bf16.msra.mxu0 %v1340_v33  ;;  %1197 = vmatpush3.bf16.msra.mxu1 %v1341_v34 }
 0x11e   :  { %v1468_v35 = vpop.f32.mrf.mxu0  ;;  %v1470_v36 = vpop.f32.mrf.mxu1 }
 0x11f   :  { %v527_v37 = vrot.slane %v1468_v35, 4  ;;  %v556_v38 = vmul.f32 %v1468_v35, %v1468_v35  ;;  %v539_v39 = vrot.slane %v1470_v36, 4  ;;  %v558_v40 = vmul.f32 %v1470_v36, %v1470_v36 }
 0x120   :  { %v1478_v41 = vpop.f32.mrf.mxu0  ;;  %v1480_v42 = vpop.f32.mrf.mxu1 }
 0x121   :  { %v528_v43 = vadd.f32 %v527_v37, %v1468_v35  ;;  %v560_v44 = vrot.slane %v556_v38, 4  ;;  %v540_v45 = vadd.f32 %v539_v39, %v1470_v36  ;;  %v572_v46 = vrot.slane %v558_v40, 4 }
 0x122   :  { %v533_v47 = vrot.slane %v1478_v41, 4  ;;  %v557_v48 = vmul.f32 %v1478_v41, %v1478_v41  ;;  %v545_v49 = vrot.slane %v1480_v42, 4  ;;  %v559_v50 = vmul.f32 %v1480_v42, %v1480_v42  ;;  %v483_v51 = vpop.f32.mrf.mxu0  ;;  %v524_v52 = vpop.f32.mrf.mxu1 }
 0x123   :  { %v529_v53 = vrot.slane %v528_v43, 2  ;;  %v561_v54 = vadd.f32 %v560_v44, %v556_v38  ;;  %v541_v55 = vrot.slane %v540_v45, 2  ;;  %v573_v56 = vadd.f32 %v572_v46, %v558_v40 }
 0x124   :  { %v534_v57 = vadd.f32 %v533_v47, %v1478_v41  ;;  %v566_v58 = vrot.slane %v557_v48, 4  ;;  %v546_v59 = vadd.f32 %v545_v49, %v1480_v42  ;;  %v578_v60 = vrot.slane %v559_v50, 4  ;;  %v484_v61 = vpop.f32.mrf.mxu0  ;;  %v525_v62 = vpop.f32.mrf.mxu1 }
 0x125   :  { %v530_v63 = vadd.f32 %v529_v53, %v528_v43  ;;  %v562_v0 = vrot.slane %v561_v54, 2  ;;  %v542_v1 = vadd.f32 %v541_v55, %v540_v45  ;;  %v574_v2 = vrot.slane %v573_v56, 2 }
 0x126   :  { %v535_v3 = vrot.slane %v534_v57, 2  ;;  %v567_v4 = vadd.f32 %v566_v58, %v557_v48  ;;  %v547_v5 = vrot.slane %v546_v59, 2  ;;  %v579_v6 = vadd.f32 %v578_v60, %v559_v50 }
 0x127   :  { %v531_v7 = vrot.slane %v530_v63, 1  ;;  %v563_v8 = vadd.f32 %v562_v0, %v561_v54  ;;  %v543_v9 = vrot.slane %v542_v1, 1  ;;  %v575_v10 = vadd.f32 %v574_v2, %v573_v56 }
 0x128   :  { %v536_v11 = vadd.f32 %v535_v3, %v534_v57  ;;  %v568_v12 = vrot.slane %v567_v4, 2  ;;  %v548_v13 = vadd.f32 %v547_v5, %v546_v59  ;;  %v580_v14 = vrot.slane %v579_v6, 2 }
 0x129   :  { %v532_v15 = vadd.f32 %v531_v7, %v530_v63  ;;  %v564_v16 = vrot.slane %v563_v8, 1  ;;  %v544_v17 = vadd.f32 %v543_v9, %v542_v1  ;;  %v576_v18 = vrot.slane %v575_v10, 1  ;;  %v596_v7 = vld [vmem:[%s1520_s2] sm:$0xf] }
 0x12a   :  { %v537_v19 = vrot.slane %v536_v11, 1  ;;  %v569_v20 = vadd.f32 %v568_v12, %v567_v4  ;;  %v549_v21 = vrot.slane %v548_v13, 1  ;;  %v581_v22 = vadd.f32 %v580_v14, %v579_v6  ;;  %v664_v6 = vld [vmem:[%s1521_s3] sm:$0xf] }
 0x12b   :  { %v1492_v23 = vmul.f32 0.125, %v532_v15  ;;  %v565_v24 = vadd.f32 %v564_v16, %v563_v8  ;;  %v1494_v25 = vmul.f32 0.125, %v544_v17  ;;  %v577_v26 = vadd.f32 %v576_v18, %v575_v10 }
 0x12c   :  { %v538_v27 = vadd.f32 %v537_v19, %v536_v11  ;;  %v570_v28 = vrot.slane %v569_v20, 1  ;;  %v550_v29 = vadd.f32 %v549_v21, %v548_v13  ;;  %v582_v30 = vrot.slane %v581_v22, 1 }
 0x12d   :  { %v584_v31 = vmul.f32 0.125, %v565_v24  ;;  %v588_v32 = vmul.f32 %v1492_v23, %v1492_v23  ;;  %v586_v33 = vmul.f32 0.125, %v577_v26  ;;  %v590_v34 = vmul.f32 %v1494_v25, %v1494_v25 }
 0x12e   :  { %v553_v37 = vmul.f32 0.125, %v538_v27  ;;  %v571_v38 = vadd.f32 %v570_v28, %v569_v20  ;;  %v555_v40 = vmul.f32 0.125, %v550_v29  ;;  %v583_v43 = vadd.f32 %v582_v30, %v581_v22 }
 0x12f   :  { %v592_v39 = vsub.f32 %v584_v31, %v588_v32  ;;  %v594_v44 = vsub.f32 %v586_v33, %v590_v34  ;;  %v1422_v55 = vmov 1966171168   ;;  %v614_v57 = vlaneseq }
 0x130   :  { %v585_v45 = vmul.f32 0.125, %v571_v38  ;;  %v589_v46 = vmul.f32 %v553_v37, %v553_v37  ;;  %v587_v48 = vmul.f32 0.125, %v583_v43  ;;  %v591_v49 = vmul.f32 %v555_v40, %v555_v40 }
 0x131   :  { %v597_v47 = vadd.f32 1e-05, %v592_v39  ;;  %v599_v50 = vadd.f32 1e-05, %v594_v44  ;;  %v612_v56 = vunpack.c.l.s4 %v1422_v55  ;;  %v615_v59 = vshrl.u32 %v614_v57, 7 }
 0x132   :  { %v593_v51 = vsub.f32 %v585_v45, %v589_v46  ;;  %v595_v52 = vsub.f32 %v587_v48, %v591_v49  ;;  %v635_v18 = vsub.f32 %v1468_v35, %v1492_v23  ;;  %v637_v19 = vsub.f32 %v1470_v36, %v1494_v25  ;;  %v1127_v44 = vld [vmem:[%s1523_s5] ss:$0 sm:$0xff] }
 0x133   :  { %1342 = vrsqrt.f32 %v597_v47  ;;  %v613_v58 = vunpack.c.0.s8 %v612_v56  ;;  %v646_v8 = vsub.s32 1, %v615_v59  ;;  %v654_v10 = vsub.s32 3, %v615_v59 }
 0x134   :  { %v598_v53 = vadd.f32 1e-05, %v593_v51  ;;  %1344 = vrsqrt.f32 %v599_v50  ;;  %v600_v54 = vadd.f32 1e-05, %v595_v52  ;;  %v642_v11 = vsub.s32 0, %v615_v59 }
 0x135   :  { %v616_v62 = vsub.s32 %v613_v58, %v615_v59  ;;  %v650_v12 = vsub.s32 2, %v615_v59  ;;  %v673_v13 = vrot.slane %v664_v6, %v646_v8  ;;  %v681_v15 = vrot.slane %v664_v6, %v654_v10 }
 0x136   :  { %1346 = vrsqrt.f32 %v598_v53  ;;  %v669_v16 = vrot.slane %v664_v6, %v642_v11  ;;  %v636_v20 = vsub.f32 %v1478_v41, %v553_v37  ;;  %v638_v21 = vsub.f32 %v1480_v42, %v555_v40 }
 0x137   :  { %1348 = vrsqrt.f32 %v600_v54  ;;  %v677_v17 = vrot.slane %v664_v6, %v650_v12 }
 0x140   :  { %v1343_v60 = vpop.eup %1342 }
 0x141   :  { %v1345_v61 = vpop.eup %1344 }
 0x143   :  { %v1347_v63 = vpop.eup %1346 }
 0x144   :  { %v1349_v0 = vpop.eup %1348  ;;  %v609_v1 = vcombine.low %v1343_v60, %v1347_v63 }
 0x145   :  { %v610_v2 = vcombine.low %v1345_v61, %v1349_v0 }
 0x146   :  { %v617_v3 = vrot.slane %v609_v1, %v616_v62 }
 0x147   :  { %v624_v4 = vrot.slane %v610_v2, %v616_v62 }
 0x149   :  { %v625_v5 = vcombine.low %v617_v3, %v624_v4 }
 0x14b   :  { %v632_v9 = vrot.slane %v625_v5, %v616_v62 }
 0x14d   :  { %v634_v14 = vmul.f32 %v632_v9, %v596_v7 }
 0x14f   :  { %v647_v22 = vrot.slane %v634_v14, %v646_v8  ;;  %v655_v24 = vrot.slane %v634_v14, %v654_v10  ;;  %v643_v26 = vrot.slane %v634_v14, %v642_v11  ;;  %v651_v27 = vrot.slane %v634_v14, %v650_v12 }
 0x151   :  { %v661_v28 = vmul.f32 %v647_v22, %v636_v20  ;;  %v663_v29 = vmul.f32 %v655_v24, %v638_v21  ;;  %v660_v30 = vmul.f32 %v643_v26, %v635_v18  ;;  %v662_v31 = vmul.f32 %v651_v27, %v637_v19 }
 0x153   :  { %v687_v32 = vadd.f32 %v673_v13, %v661_v28  ;;  %v689_v33 = vadd.f32 %v681_v15, %v663_v29  ;;  %v686_v34 = vadd.f32 %v669_v16, %v660_v30  ;;  %v688_v38 = vadd.f32 %v677_v17, %v662_v31 }
 0x155   :  { %v691_v35 = vmax.f32 %v687_v32, 0.0  ;;  %v693_v23 = vmax.f32 %v689_v33, 0.0  ;;  %v690_v39 = vmax.f32 %v686_v34, 0.0  ;;  %v692_v36 = vmax.f32 %v688_v38, 0.0 }
 0x157   :  { %v695_v25 = vpack.c.bf16 %v691_v35, %v691_v35  ;;  %v697_v41 = vpack.c.bf16 %v693_v23, %v693_v23  ;;  %v694_v37 = vpack.c.bf16 %v690_v39, %v690_v39  ;;  %v696_v42 = vpack.c.bf16 %v692_v36, %v692_v36 }
 0x159   :  { %993 = vmatprep.mubr.bf16.mxu0 %v695_v25  ;;  %1033 = vmatprep.mubr.bf16.mxu1 %v697_v41 }
 0x15a   :  { %994 = vmatmul.mubr.bf16.vlgmr.msra.gmra.mxu0 %v694_v37  ;;  %1034 = vmatmul.mubr.bf16.vlgmr.msra.gmra.mxu1 %v696_v42 }
 0x21a   :  { %v1176_v40 = vpop.f32.mrf.mxu0  ;;  %v1198_v43 = vpop.f32.mrf.mxu1 }
 0x21c   :  { %v1177_v45 = vpop.f32.mrf.mxu0  ;;  %v1199_v46 = vpop.f32.mrf.mxu1 }
 0x21d   :  { %v1178_v47 = vadd.f32 %v1177_v45, %v1176_v40  ;;  %v1200_v51 = vadd.f32 %v1199_v46, %v1198_v43 }
 0x21e   :  { %v1179_v48 = vpop.f32.mrf.mxu0  ;;  %v1201_v49 = vpop.f32.mrf.mxu1 }
 0x21f   :  { %v996_v50 = vadd.f32 %v1178_v47, %v1127_v44 }
 0x220   :  { %v1180_v52 = vpop.f32.mrf.mxu0  ;;  %v1202_v53 = vpop.f32.mrf.mxu1 }
 0x221   :  { %v1036_v54 = vadd.f32 %v1200_v51, %v996_v50 }
 0x223   :  { %v1042_v55 = vmul.f32 0.01, %v1036_v54  ;;  %vm1041_vm0 = vcmp.ge.f32.partialorder %v1036_v54, 0.0 }
 0x225   :  { %v1043_v56 = vsel %vm1041_vm0, %v1036_v54, %v1042_v55 }
 0x226   :  { %1044 = vst [vmem:[#allocation7] sm:$0xff] %v1043_v56 }
 0x227   :  { %1401 = shalt.err (!%p1398_p0)
}
 0x228   :  { %1054 = dma.vmem_to_hbm [thread:$0]  %s1052_s15, 128, %s1524_s6, [#allocation4]  }
 0x229   :  { %1414 = dma.done.wait [#allocation4], 128  }
 0x22a   :  { %1415 = vsyncadd [#allocation4], 4294967168 }
 0x22b   :  { %1058 = vsyncpa [#allocation3], 1 }
 0x22c   :  { %1059 = vsyncpa [#allocation6], 1 }
 0x22d   :  { %1060 = vsyncpa [#allocation4], 1 }

</bundles_post_ra>
